<compile_context>
chip_gen: v5e
topology: v5e:2x2
jax: 0.10.0
libtpu: 0.0.40
codegen_flags: <defaults>
</compile_context>

<pallas_src>
import math

import jax
import jax.numpy as jnp
from jax.experimental import pallas as pl
from jax.experimental.pallas import tpu as pltpu


_SQRT1_2 = 1.0 / math.sqrt(2.0)


def _round_up(n, m):
    return ((n + m - 1) // m) * m


def _erf_f32(z):
    # Abramowitz & Stegun 7.1.26 rational approximation, |error| < 1.5e-7.
    # The reciprocal goes to the EUP (approx), keeping the VALU slots free.
    a1, a2, a3, a4, a5 = (0.254829592, -0.284496736, 1.421413741,
                          -1.453152027, 1.061405429)
    p = 0.3275911
    az = jnp.abs(z)
    t = pl.reciprocal(1.0 + p * az, approx=True)
    poly = t * (a1 + t * (a2 + t * (a3 + t * (a4 + t * a5))))
    y = 1.0 - poly * jnp.exp(-az * az)
    return jnp.where(z >= 0.0, y, -y)


def _gelu_exact(h):
    # Matches torch.nn.GELU() default (exact / erf formulation).
    return h * 0.5 * (1.0 + _erf_f32(h * _SQRT1_2))


def _time_mlp_kernel(x_ref, wcat_ref, phase_ref, w1x_ref, w1sc_ref, b1_ref,
                     w2_ref, b2_ref, o_ref):
    # x_ref:     (bb, 1)                f32 timestep values
    # wcat_ref:  (1, 2*half_dim)        [w, w] already scaled by 2*pi
    # phase_ref: (1, 2*half_dim)        [0...0, pi/2...pi/2]
    # w1x_ref:   (1, T)                 W1 row multiplying the raw x column
    # w1sc_ref:  (2*half_dim, T)        W1 [sin rows; cos rows], f32
    # b1_ref:    (1, T)
    # w2_ref:    (T, tn)                bf16 (dominant operand)
    # b2_ref:    (1, tn)
    # o_ref:     (bb, tn)               lane-dense output tile
    x = x_ref[...]                                            # (bb, 1) f32

    # One transcendental region gives sin AND cos (cos(t) = sin(t + pi/2)).
    feats = jnp.sin(x * wcat_ref[...] + phase_ref[...])       # (bb, 2*half_dim)

    # Linear1 over the FULL hidden width (needed as the W2 contraction input).
    # K = 2*half_dim (tiny), weights 16xT (tiny) -> keep f32, default precision.
    h = jnp.dot(feats, w1sc_ref[...], preferred_element_type=jnp.float32)
    h = h + x * w1x_ref[...] + b1_ref[...]                    # x column + bias

    g = _gelu_exact(h)                                        # (bb, T) f32

    # Linear2: the dominant matmul. Native single-pass bf16 MXU, f32 accumulate.
    out = jnp.dot(g.astype(jnp.bfloat16), w2_ref[...],
                  preferred_element_type=jnp.float32) + b2_ref[...]
    o_ref[...] = out.astype(o_ref.dtype)


def prepare_time_mlp_params(weights, w1, b1, w2, b2):
    """One-time parameter prep (NOT per call).

    - folds 2*pi into the sinusoidal weights and duplicates them as [w, w]
      with a phase row so a single sin() produces [sin | cos],
    - splits W1 into the x-row and the stacked sin/cos rows,
    - stores W2 (the dominant HBM read) in bf16,
    - 2D-ifies the biases.
    """
    half_dim = weights.shape[0]
    assert w1.shape[0] == 2 * half_dim + 1
    w32 = weights.astype(jnp.float32) * (2.0 * math.pi)
    w_cat = jnp.concatenate([w32, w32]).reshape(1, 2 * half_dim)
    phase = jnp.concatenate(
        [jnp.zeros((half_dim,), jnp.float32),
         jnp.full((half_dim,), 0.5 * math.pi, jnp.float32)]).reshape(1, 2 * half_dim)
    w1 = w1.astype(jnp.float32)
    w1x = w1[0:1, :]            # row multiplying the raw x column
    w1sc = w1[1:, :]            # [sin rows; cos rows], (2*half_dim, T), f32
    b1_2d = b1.astype(jnp.float32).reshape(1, -1)
    w2_bf16 = w2.astype(jnp.bfloat16)    # dominant operand -> bf16 halves DMA
    b2_2d = b2.astype(jnp.float32).reshape(1, -1)
    return (w_cat, phase, w1x, w1sc, b1_2d, w2_bf16, b2_2d)


def time_mlp(x, params, *, max_block_b=256, max_block_n=512,
             out_dtype=jnp.float32):
    """Fused LearnedSinusoidalPosEmb -> Linear -> GELU -> Linear.

    x: (b,) float timesteps (UViT gets log-SNR values here). Returns
    (b, time_dim) embedding in `out_dtype`.

    Note: at small b this kernel is HBM-bound on the W2 read; the biggest
    system-level win is batching many timesteps per call (e.g. all sampling
    steps at once) so the weight DMA is amortized.
    """
    w_cat, phase, w1x, w1sc, b1, w2, b2 = params
    b = x.shape[0]
    two_half = w_cat.shape[1]
    time_dim = w2.shape[1]

    # --- batch tiling: avoid big padded tail blocks in the common case -------
    max_block_b = max(8, (max_block_b // 8) * 8)
    b8 = _round_up(b, 8)
    block_b = b8 if b8 <= max_block_b else max_block_b
    bp = _round_up(b, block_b)
    x2 = x.astype(jnp.float32).reshape(b, 1)
    if bp != b:
        x2 = jnp.pad(x2, ((0, bp - b), (0, 0)))

    # --- N (time_dim) tiling: MXU-friendly multiples, caps per-step VMEM -----
    tn = time_dim
    for cand in (512, 256, 128):
        if cand <= max_block_n and time_dim % cand == 0:
            tn = cand
            break

    nb = bp // block_b
    nj = time_dim // tn

    const = lambda i, j: (0, 0)   # constant blocks: fetched once, VMEM-resident

    out = pl.pallas_call(
        _time_mlp_kernel,
        out_shape=jax.ShapeDtypeStruct((bp, time_dim), out_dtype),
        grid=(nb, nj),
        in_specs=[
            pl.BlockSpec((block_b, 1), lambda i, j: (i, 0)),      # x
            pl.BlockSpec((1, two_half), const),                   # [w, w] * 2pi
            pl.BlockSpec((1, two_half), const),                   # phase row
            pl.BlockSpec((1, time_dim), const),                   # W1 x-row
            pl.BlockSpec((two_half, time_dim), const),            # W1 sin/cos rows
            pl.BlockSpec((1, time_dim), const),                   # b1
            pl.BlockSpec((time_dim, tn), lambda i, j: (0, j)),    # W2 column tile
            pl.BlockSpec((1, tn), lambda i, j: (0, j)),           # b2 tile
        ],
        out_specs=pl.BlockSpec((block_b, tn), lambda i, j: (i, j)),
        compiler_params=pltpu.CompilerParams(
            dimension_semantics=("parallel", "parallel"),
            vmem_limit_bytes=32 * 1024 * 1024),
    )(x2, w_cat, phase, w1x, w1sc, b1, w2, b2)

    return out if bp == b else out[:b]


# TODO(synk): the UViT conv/attention backbone and GaussianDiffusion's
# q_sample / p_sample sampling loop are not kernelized here; only the fused
# time-embedding MLP head (used by every forward/sampling step) is.

if __name__ == "__main__":
    key = jax.random.PRNGKey(0)
    k1, k2, k3, k4, k5, k6 = jax.random.split(key, 6)

    # Shapes consistent with UViT defaults (learned_sinusoidal_dim=16) at a
    # small model dim: dim=128 -> time_dim = dim*4 = 512, fourier_dim = 17.
    learned_sinusoidal_dim = 16
    half_dim = learned_sinusoidal_dim // 2          # 8
    fourier_dim = learned_sinusoidal_dim + 1        # 17
    dim = 128
    time_dim = dim * 4                              # 512
    batch = 8

    weights = jax.random.normal(k1, (half_dim,), jnp.float32)
    w1 = jax.random.normal(k2, (fourier_dim, time_dim), jnp.float32) / math.sqrt(fourier_dim)
    b1 = jax.random.normal(k3, (time_dim,), jnp.float32) * 0.01
    w2 = jax.random.normal(k4, (time_dim, time_dim), jnp.float32) / math.sqrt(time_dim)
    b2 = jax.random.normal(k5, (time_dim,), jnp.float32) * 0.01
    x = jax.random.uniform(k6, (batch,), jnp.float32)   # diffusion times in [0,1)

    params = prepare_time_mlp_params(weights, w1, b1, w2, b2)
    # max_block_n=256 -> tn=256, grid=(1, 2): exercises the N-tiling path.
    out = time_mlp(x, params, max_block_n=256)
    out = jax.block_until_ready(out)

    # Pure-JAX exact-f32 reference matching the PyTorch time_mlp semantics
    # (concat([x, sin, cos]) -> Linear -> exact GELU -> Linear). HIGHEST here
    # is only for the host-side reference, not the kernel.
    freqs = x[:, None] * weights[None, :] * 2.0 * math.pi
    fourier = jnp.concatenate([x[:, None], jnp.sin(freqs), jnp.cos(freqs)], axis=-1)
    h_ref = jnp.matmul(fourier, w1, precision=jax.lax.Precision.HIGHEST) + b1
    g_ref = jax.nn.gelu(h_ref, approximate=False)
    ref = jnp.matmul(g_ref, w2, precision=jax.lax.Precision.HIGHEST) + b2

    assert out.shape == (batch, time_dim), out.shape
    max_err = float(jnp.max(jnp.abs(out.astype(jnp.float32) - ref)))
    # bf16 W2 + bf16 activations at the second matmul bound the error at a few
    # 1e-3; 2e-2 leaves comfortable margin while still catching structural bugs.
    assert jnp.allclose(out.astype(jnp.float32), ref, atol=2e-2, rtol=2e-2), max_err
    print("KERNEL_OK")
</pallas_src>

<mosaic_0001>
module attributes {stable_mosaic.version = 11 : i64} {
  func.func @_time_mlp_kernel(%arg0: i32, %arg1: i32, %arg2: memref<8x1xf32, #tpu.memory_space<vmem>>, %arg3: memref<1x16xf32, #tpu.memory_space<vmem>>, %arg4: memref<1x16xf32, #tpu.memory_space<vmem>>, %arg5: memref<1x512xf32, #tpu.memory_space<vmem>>, %arg6: memref<16x512xf32, #tpu.memory_space<vmem>>, %arg7: memref<1x512xf32, #tpu.memory_space<vmem>>, %arg8: memref<512x256xbf16, #tpu.memory_space<vmem>>, %arg9: memref<1x256xf32, #tpu.memory_space<vmem>>, %arg10: memref<8x256xf32, #tpu.memory_space<vmem>>) attributes {dimension_semantics = [#tpu.dimension_semantics<parallel>, #tpu.dimension_semantics<parallel>], iteration_bounds = array<i64: 1, 2>, scalar_prefetch = 0 : i64, scratch_operands = 0 : i64, tpu.core_type = #tpu.core_type<tc>, window_params = [{transform_indices = @transform_0, window_bounds = array<i64: 8, 1>}, {pipeline_mode = #tpu.pipeline_mode<synchronous>, transform_indices = @transform_1, window_bounds = array<i64: 1, 16>}, {pipeline_mode = #tpu.pipeline_mode<synchronous>, transform_indices = @transform_2, window_bounds = array<i64: 1, 16>}, {pipeline_mode = #tpu.pipeline_mode<synchronous>, transform_indices = @transform_3, window_bounds = array<i64: 1, 512>}, {pipeline_mode = #tpu.pipeline_mode<synchronous>, transform_indices = @transform_4, window_bounds = array<i64: 16, 512>}, {pipeline_mode = #tpu.pipeline_mode<synchronous>, transform_indices = @transform_5, window_bounds = array<i64: 1, 512>}, {transform_indices = @transform_6, window_bounds = array<i64: 512, 256>}, {transform_indices = @transform_7, window_bounds = array<i64: 1, 256>}, {transform_indices = @transform_8, window_bounds = array<i64: 8, 256>}]} {
    %c0 = arith.constant 0 : index
    %c0_0 = arith.constant 0 : index
    %0 = vector.load %arg2[%c0, %c0_0] : memref<8x1xf32, #tpu.memory_space<vmem>>, vector<8x1xf32>
    %c0_1 = arith.constant 0 : index
    %c0_2 = arith.constant 0 : index
    %1 = vector.load %arg3[%c0_1, %c0_2] : memref<1x16xf32, #tpu.memory_space<vmem>>, vector<1x16xf32>
    %2 = vector.broadcast %0 : vector<8x1xf32> to vector<8x16xf32>
    %3 = vector.broadcast %1 : vector<1x16xf32> to vector<8x16xf32>
    %4 = arith.mulf %2, %3 : vector<8x16xf32>
    %c0_3 = arith.constant 0 : index
    %c0_4 = arith.constant 0 : index
    %5 = vector.load %arg4[%c0_3, %c0_4] : memref<1x16xf32, #tpu.memory_space<vmem>>, vector<1x16xf32>
    %6 = vector.broadcast %5 : vector<1x16xf32> to vector<8x16xf32>
    %7 = arith.addf %4, %6 : vector<8x16xf32>
    %8 = math.sin %7 : vector<8x16xf32>
    %c0_5 = arith.constant 0 : index
    %c0_6 = arith.constant 0 : index
    %9 = vector.load %arg6[%c0_5, %c0_6] : memref<16x512xf32, #tpu.memory_space<vmem>>, vector<16x512xf32>
    %cst = arith.constant dense<0.000000e+00> : vector<8x512xf32>
    %10 = tpu.matmul %8, %9, %cst {dimension_numbers = #tpu.dot_dimension_numbers<[1], [0], [0], [1], [0, 0, 1, 1], [], []>} : vector<8x16xf32>, vector<16x512xf32>, vector<8x512xf32> -> vector<8x512xf32>
    %c0_7 = arith.constant 0 : index
    %c0_8 = arith.constant 0 : index
    %11 = vector.load %arg5[%c0_7, %c0_8] : memref<1x512xf32, #tpu.memory_space<vmem>>, vector<1x512xf32>
    %12 = vector.broadcast %0 : vector<8x1xf32> to vector<8x512xf32>
    %13 = vector.broadcast %11 : vector<1x512xf32> to vector<8x512xf32>
    %14 = arith.mulf %12, %13 : vector<8x512xf32>
    %15 = arith.addf %10, %14 : vector<8x512xf32>
    %c0_9 = arith.constant 0 : index
    %c0_10 = arith.constant 0 : index
    %16 = vector.load %arg7[%c0_9, %c0_10] : memref<1x512xf32, #tpu.memory_space<vmem>>, vector<1x512xf32>
    %17 = vector.broadcast %16 : vector<1x512xf32> to vector<8x512xf32>
    %18 = arith.addf %15, %17 : vector<8x512xf32>
    %cst_11 = arith.constant 5.000000e-01 : f32
    %19 = vector.broadcast %cst_11 : f32 to vector<8x512xf32>
    %20 = arith.mulf %18, %19 : vector<8x512xf32>
    %cst_12 = arith.constant 0.707106769 : f32
    %21 = vector.broadcast %cst_12 : f32 to vector<8x512xf32>
    %22 = arith.mulf %18, %21 : vector<8x512xf32>
    %23 = math.absf %22 : vector<8x512xf32>
    %cst_13 = arith.constant 0.327591091 : f32
    %24 = vector.broadcast %cst_13 : f32 to vector<8x512xf32>
    %25 = arith.mulf %24, %23 : vector<8x512xf32>
    %cst_14 = arith.constant 1.000000e+00 : f32
    %26 = vector.broadcast %cst_14 : f32 to vector<8x512xf32>
    %27 = arith.addf %26, %25 : vector<8x512xf32>
    %28 = tpu.reciprocal %27 {approx = true} : vector<8x512xf32> -> vector<8x512xf32>
    %cst_15 = arith.constant 1.06140542 : f32
    %29 = vector.broadcast %cst_15 : f32 to vector<8x512xf32>
    %30 = arith.mulf %28, %29 : vector<8x512xf32>
    %cst_16 = arith.constant -1.45315206 : f32
    %31 = vector.broadcast %cst_16 : f32 to vector<8x512xf32>
    %32 = arith.addf %31, %30 : vector<8x512xf32>
    %33 = arith.mulf %28, %32 : vector<8x512xf32>
    %cst_17 = arith.constant 1.42141378 : f32
    %34 = vector.broadcast %cst_17 : f32 to vector<8x512xf32>
    %35 = arith.addf %34, %33 : vector<8x512xf32>
    %36 = arith.mulf %28, %35 : vector<8x512xf32>
    %cst_18 = arith.constant -0.284496725 : f32
    %37 = vector.broadcast %cst_18 : f32 to vector<8x512xf32>
    %38 = arith.addf %37, %36 : vector<8x512xf32>
    %39 = arith.mulf %28, %38 : vector<8x512xf32>
    %cst_19 = arith.constant 0.254829586 : f32
    %40 = vector.broadcast %cst_19 : f32 to vector<8x512xf32>
    %41 = arith.addf %40, %39 : vector<8x512xf32>
    %42 = arith.mulf %28, %41 : vector<8x512xf32>
    %cst_20 = arith.constant 0.000000e+00 : f32
    %43 = vector.broadcast %cst_20 : f32 to vector<8x512xf32>
    %44 = arith.subf %43, %23 : vector<8x512xf32>
    %45 = arith.mulf %44, %23 : vector<8x512xf32>
    %46 = math.exp %45 : vector<8x512xf32>
    %47 = arith.mulf %42, %46 : vector<8x512xf32>
    %cst_21 = arith.constant 1.000000e+00 : f32
    %48 = vector.broadcast %cst_21 : f32 to vector<8x512xf32>
    %49 = arith.subf %48, %47 : vector<8x512xf32>
    %cst_22 = arith.constant 0.000000e+00 : f32
    %50 = vector.broadcast %cst_22 : f32 to vector<8x512xf32>
    %51 = arith.cmpf oge, %22, %50 : vector<8x512xf32>
    %cst_23 = arith.constant 0.000000e+00 : f32
    %52 = vector.broadcast %cst_23 : f32 to vector<8x512xf32>
    %53 = arith.subf %52, %49 : vector<8x512xf32>
    %54 = arith.select %51, %49, %53 : vector<8x512xi1>, vector<8x512xf32>
    %cst_24 = arith.constant 1.000000e+00 : f32
    %55 = vector.broadcast %cst_24 : f32 to vector<8x512xf32>
    %56 = arith.addf %55, %54 : vector<8x512xf32>
    %57 = arith.mulf %20, %56 : vector<8x512xf32>
    %58 = arith.truncf %57 : vector<8x512xf32> to vector<8x512xbf16>
    %c0_25 = arith.constant 0 : index
    %c0_26 = arith.constant 0 : index
    %59 = vector.load %arg8[%c0_25, %c0_26] : memref<512x256xbf16, #tpu.memory_space<vmem>>, vector<512x256xbf16>
    %cst_27 = arith.constant dense<0.000000e+00> : vector<8x256xf32>
    %60 = tpu.matmul %58, %59, %cst_27 {dimension_numbers = #tpu.dot_dimension_numbers<[1], [0], [0], [1], [0, 0, 1, 1], [], []>} : vector<8x512xbf16>, vector<512x256xbf16>, vector<8x256xf32> -> vector<8x256xf32>
    %c0_28 = arith.constant 0 : index
    %c0_29 = arith.constant 0 : index
    %61 = vector.load %arg9[%c0_28, %c0_29] : memref<1x256xf32, #tpu.memory_space<vmem>>, vector<1x256xf32>
    %62 = vector.broadcast %61 : vector<1x256xf32> to vector<8x256xf32>
    %63 = arith.addf %60, %62 : vector<8x256xf32>
    %c0_30 = arith.constant 0 : index
    %c0_31 = arith.constant 0 : index
    %64 = vector.load %arg10[%c0_30, %c0_31] : memref<8x256xf32, #tpu.memory_space<vmem>>, vector<8x256xf32>
    tpu.vector_store %arg10[%c0_30, %c0_31], %63 {strides = array<i32>} : memref<8x256xf32, #tpu.memory_space<vmem>>, vector<8x256xf32>,
    return
  }
  func.func @transform_0(%arg0: i32, %arg1: i32) -> (i32, i32) {
    %c0_i32 = arith.constant 0 : i32
    %c0_i32_0 = arith.constant 0 : i32
    return %arg0, %c0_i32 : i32, i32
  }
  func.func @transform_1(%arg0: i32, %arg1: i32) -> (i32, i32) {
    %c0_i32 = arith.constant 0 : i32
    %c0_i32_0 = arith.constant 0 : i32
    %c0_i32_1 = arith.constant 0 : i32
    return %c0_i32, %c0_i32_0 : i32, i32
  }
  func.func @transform_2(%arg0: i32, %arg1: i32) -> (i32, i32) {
    %c0_i32 = arith.constant 0 : i32
    %c0_i32_0 = arith.constant 0 : i32
    %c0_i32_1 = arith.constant 0 : i32
    return %c0_i32, %c0_i32_0 : i32, i32
  }
  func.func @transform_3(%arg0: i32, %arg1: i32) -> (i32, i32) {
    %c0_i32 = arith.constant 0 : i32
    %c0_i32_0 = arith.constant 0 : i32
    %c0_i32_1 = arith.constant 0 : i32
    return %c0_i32, %c0_i32_0 : i32, i32
  }
  func.func @transform_4(%arg0: i32, %arg1: i32) -> (i32, i32) {
    %c0_i32 = arith.constant 0 : i32
    %c0_i32_0 = arith.constant 0 : i32
    %c0_i32_1 = arith.constant 0 : i32
    return %c0_i32, %c0_i32_0 : i32, i32
  }
  func.func @transform_5(%arg0: i32, %arg1: i32) -> (i32, i32) {
    %c0_i32 = arith.constant 0 : i32
    %c0_i32_0 = arith.constant 0 : i32
    %c0_i32_1 = arith.constant 0 : i32
    return %c0_i32, %c0_i32_0 : i32, i32
  }
  func.func @transform_6(%arg0: i32, %arg1: i32) -> (i32, i32) {
    %c0_i32 = arith.constant 0 : i32
    %c0_i32_0 = arith.constant 0 : i32
    return %c0_i32, %arg1 : i32, i32
  }
  func.func @transform_7(%arg0: i32, %arg1: i32) -> (i32, i32) {
    %c0_i32 = arith.constant 0 : i32
    %c0_i32_0 = arith.constant 0 : i32
    return %c0_i32, %arg1 : i32, i32
  }
  func.func @transform_8(%arg0: i32, %arg1: i32) -> (i32, i32) {
    %c0_i32 = arith.constant 0 : i32
    return %arg0, %arg1 : i32, i32
  }
}

</mosaic_0001>

<bundles_post_ra>
// kernel: tpu_custom_call.1
= control target key start
LH: loop header
LB: loop body
LE: loop exit
PB: predicated region body
PF: predicated region fallthrough
CT: control target
= control target key end

     0   :  { %s2701_s0 = inlined_call_operand.vmem [shape: f32[8,1], index: 0, kind: input, shape index: {}]   ;;  %s2702_s1 = inlined_call_operand.hbm [shape: f32[1,16], index: 1, kind: input, shape index: {}]   ;;  %s2703_s2 = inlined_call_operand.hbm [shape: f32[1,16], index: 2, kind: input, shape index: {}]   ;;  %s2704_s3 = inlined_call_operand.vmem [shape: f32[1,512], index: 3, kind: input, shape index: {}]   ;;  %s2705_s4 = inlined_call_operand.hbm [shape: f32[16,512], index: 4, kind: input, shape index: {}]   ;;  %s2706_s5 = inlined_call_operand.vmem [shape: f32[1,512], index: 5, kind: input, shape index: {}]   ;;  %s2707_s6 = inlined_call_operand.hbm [shape: bf16[512,512], index: 6, kind: input, shape index: {}]   ;;  %s2708_s7 = inlined_call_operand.vmem [shape: f32[1,512], index: 7, kind: input, shape index: {}]   ;;  %s2709_s8 = inlined_call_operand.hbm [shape: f32[8,512], index: 8, kind: output, shape index: {}]  }
   0x1   :  { %2716 = sst [smem:[#allocation19_spill]] %s2702_s1 }
   0x2   :  { %2717 = sst [smem:[#allocation20_spill]] %s2703_s2 }
   0x3   :  { %2718 = sst [smem:[#allocation21_spill]] %s2705_s4 }
   0x4   :  { %13 = vsyncpa [#allocation3], 0 }
   0x5   :  { %14 = vsyncpa [#allocation6], 0 }
   0x6   :  { %15 = vsyncpa [#allocation9], 0 }
   0x7   :  { %17 = vsyncpa [#allocation9 + $0x1], 0 }
   0x8   :  { %18 = vsyncpa [#allocation4], 0 }
   0x9   :  { %20 = vsyncpa [#allocation4 + $0x1], 0  ;;  %s2222_s27 = smov 0   ;;  %s2224_s28 = smov 0  }
   0xa   :  { %s2226_s29 = smov 0   ;;  %s2228_s30 = smov 0  }
   0xb   :  { %s2230_s9 = smov 0   ;;  %s2232_s10 = smov 0  }
   0xc LB: > { %2719 = sst [smem:[#allocation15_spill]] %s2140_s27  ;;  %s1474_s11 = sadd.s32 4294967295, %s2160_s10   ;;  %s2160_s10 = sphi %s2232_s10, %s26_s10   ;;  %s2156_s9 = sphi %s2230_s9, %s2743_s9   ;;  %s2152_s30 = sphi %s2228_s30, %s2742_s30   ;;  %s2148_s29 = sphi %s2226_s29, %s2741_s29   ;;  %s2144_s28 = sphi %s2224_s28, %s2740_s28   ;;  %s2140_s27 = sphi %s2222_s27, %s2739_s27  }
   0xd   : > { %2720 = sst [smem:[#allocation16_spill]] %s2160_s10  ;;  %s1475_s12 = sadd.s32 4294967294, %s2160_s10  }
   0xe   : > { %p183_p0 = scmp.ne.s32.totalorder %s2148_s29, %s2144_s28  ;;  %p184_p1 = scmp.eq.s32.totalorder %s2160_s10, 0 }
   0xf   : > { %p189_p2 = scmp.ne.s32.totalorder %s2144_s28, %s2140_s27  ;;  %p2260_p3 = scmp.eq.s32.totalorder %s1474_s11, 0 }
  0x10   : > { %p241_p4 = scmp.eq.s32.totalorder %s1474_s11, 1  ;;  %p2264_p5 = por %p184_p1, %p183_p0 }
  0x11   : > { %p247_p6 = scmp.eq.s32.totalorder %s1475_s12, 1  ;;  %p2270_p7 = por %p2260_p3, %p189_p2 }
  0x12   : > { %p2274_p8 = por %p241_p4, %p183_p0  ;;  %p1476_p10 = scmp.ge.s32.totalorder %s2160_s10, 1 }
  0x13   : > { %p2278_p9 = por %p247_p6, %p189_p2  ;;  %p254_p11 = scmp.lt.s32.totalorder %s2160_s10, 3 }
  0x14   : > { %s2724_s17 = scalar_select %p2274_p8, 1, 0 }
  0x15   : > { %s2726_s18 = scalar_select %p2278_p9, 1, 0 }
  0x16   : > { %2725 = sst [smem:[#allocation17_spill]] %s2724_s17  ;;  %p2287_p12 = pnand %p1476_p10, %p254_p11 }
  0x17   : > { %2727 = sst [smem:[#allocation18_spill]] %s2726_s18  ;;  %s2162_s23 = smov [#allocation5]  }
  0x18   : > { %s2728_s2 = sld [smem:[#allocation20_spill]]  ;;  %s287_s24 = sshll.u32 %s2162_s23, 4  ;;  %s288_s24 = int_to_ptr.vmem [resolvable:$true] %s287_s24 }
  0x19   : > { %p1481_p13 = scmp.ge.s32.totalorder %s2160_s10, 2  ;;  %p1842_p0 = pneg %p2287_p12 }
  0x1a   : > { %p1863_p1 = scmp.lt.s32.totalorder %s2160_s10, 2  ;;  %s2732_s1 = sld [smem:[#allocation19_spill]] }
  0x1b   : > { %p2297_p2 = pnand %p1842_p0, %p2260_p3  ;;  %s2163_s20 = smov [#allocation2]  }
  0x1c   : > { %p2303_p4 = pnand %p1863_p1, %p2264_p5  ;;  %s275_s23 = sshll.u32 %s2163_s20, 4  ;;  %s276_s23 = int_to_ptr.vmem [resolvable:$true] %s275_s23 }
  0x1d   : > { %s2733_s4 = sld [smem:[#allocation21_spill]]  ;;  %s2164_s10 = smov [#allocation7]  }
  0x1e   : > { %s285_s21 = sshll.u32 %s2728_s2, 4  ;;  %s301_s11 = sshll.u32 %s2164_s10, 4  ;;  %s286_s21 = int_to_ptr.hbm [resolvable:$true] %s285_s21  ;;  %s302_s11 = int_to_ptr.vmem [resolvable:$true] %s301_s11 }
  0x1f   : > { %1848 = dma.hbm_to_vmem [thread:$0]  (!%p2297_p2), %s286_s21, 16, %s288_s24, [#allocation6]  }
  0x20   : > { %s273_s19 = sshll.u32 %s2732_s1, 4  ;;  %s2165_s12 = smov 512   ;;  %s274_s19 = int_to_ptr.hbm [resolvable:$true] %s273_s19 }
  0x21   : > { %1845 = dma.hbm_to_vmem [thread:$0]  (!%p2297_p2), %s274_s19, 16, %s276_s23, [#allocation3]  }
  0x22   : > { %s2166_s1 = smov 32   ;;  %s318_s21 = sand.u32 1, %s2148_s29  }
  0x23   : > { %s299_s2 = sshll.u32 %s2733_s4, 4  ;;  %s35_s24 = sadd.s32 1, %s2156_s9  ;;  %s300_s2 = int_to_ptr.hbm [resolvable:$true] %s299_s2 }
  0x24   : > { %1851 = dma.hbm_to_vmem [thread:$0]  (!%p2297_p2), %s300_s2, 1024, %s302_s11, [#allocation6], %s2165_s12, %s2165_s12, %s2166_s1  }
  0x25   : > { %p36_p5 = scmp.ge.s32.totalorder %s35_s24, 2  ;;  %s1482_s20 = sshll.u32 %s318_s21, 9 }
  0x26   : > { %s1760_s13 = sshll.u32 %s2156_s9, 3  ;;  %s322_s23 = scalar_lea.vmem [#allocation8], %s1482_s20 }
  0x27   : > { %s2745_s24 = smov (%p36_p5, %s35_s24), 0  ;;  %s327_s10 = scalar_lea.hbm %s2707_s6, %s1760_s13 }
  0x28   : > { %s330_s4 = sshll.u32 %s322_s23, 4  ;;  %s173_s18 = ssub.s32 %s2156_s9, %s2745_s24  ;;  %s331_s4 = int_to_ptr.vmem [resolvable:$true] %s330_s4 }
  0x29   : > { %s328_s25 = sshll.u32 %s327_s10, 4  ;;  %p174_p6 = scmp.eq.s32.totalorder %s173_s18, 0  ;;  %s329_s25 = int_to_ptr.hbm [resolvable:$true] %s328_s25 }
  0x2a   : > { %s2734_s1 = sadd.s32 1, %s2148_s29  ;;  %s319_s11 = scalar_lea.sflag [#allocation9], %s318_s21 }
  0x2b   : > { %s2332_s2 = scalar_select %p174_p6, %s2148_s29, %s2734_s1  }
  0x2c   : > { %s2167_s12 = smov 256   ;;  %s2168_s27 = smov 128  }
  0x2d   : > { %s2169_s17 = smov 8   ;;  %350 = sbr.rel (%p2287_p12) target bundleno = 614 (0x266), region = 52 }
  0x2e   : > { %1855 = dma.hbm_to_vmem [thread:$0]  (!%p2303_p4), %s329_s25, 8192, %s331_s4, %s319_s11, %s2167_s12, %s2168_s27, %s2169_s17  }
  0x32   : > { %2123 = dma.done.wait (%p2260_p3), [#allocation3], 16  }
  0x33   : > { %2125 = vsyncadd (%p2260_p3), [#allocation3], 4294967280 }
  0x34   : > { %2127 = dma.done.wait (%p2260_p3), [#allocation6], 1040  }
  0x35   : > { %2129 = vsyncadd (%p2260_p3), [#allocation6], 4294966256  ;;  %s2347_s18 = sand.u32 1, %s2144_s28  }
  0x36   : > { %s1489_s4 = sshll.u32 %s2347_s18, 9  ;;  %s368_s27 = scalar_lea.sflag [#allocation9], %s2347_s18 }
  0x37   : > { %s2351_s17 = scalar_lea.vmem [#allocation8], %s1489_s4 }
  0x38   : > { %2131 = dma.done.wait (%p2270_p7), %s368_s27, 8192  }
  0x39   : > { %2133 = vsyncadd (%p2270_p7), %s368_s27, 4294959104  ;;  %v2170_v0 = vmov 0   ;;  %v424_v1 = vld [vmem:[%s2701_s0] sm:$0xff]  ;;  %v600_v3 = vld [vmem:[#allocation7 + $0x28] sm:$0xff]  ;;  %v2171_v26 = vmov 683565275  }
  0x3a   : > { %1931 = vset.pattern.permute.xlu0 %v2170_v0  ;;  %v599_v2 = vld [vmem:[#allocation7 + $0x20] sm:$0xff]  ;;  %v601_v4 = vld [vmem:[#allocation7 + $0x30] sm:$0xff]  ;;  %655 = vmatpush.msra.mxu1 %v600_v3  ;;  %v602_v5 = vld [vmem:[#allocation7 + $0x38] sm:$0xff]  ;;  %v2172_v28 = vmov 2475754826   ;;  %s1491_s13 = sshll.u32 %s2152_s30, 1 }
  0x3b   : > { %428 = vperm.xlu0 %1931, %v424_v1   ;;  %635 = vmatpush.msra.mxu0 %v599_v2  ;;  %v595_v6 = vld [vmem:[#allocation7] sm:$0xff]  ;;  %v596_v7 = vld [vmem:[#allocation7 + $0x8] sm:$0xff]  ;;  %v597_v8 = vld [vmem:[#allocation7 + $0x10] sm:$0xff]  ;;  %v2173_v31 = vmov 2131351028   ;;  %p419_p3 = scmp.lt.s32.totalorder %s1491_s13, 3 }
  0x3c   : > { %675 = vmatpush.msra.mxu2 %v601_v4  ;;  %695 = vmatpush.msra.mxu3 %v602_v5  ;;  %v598_v9 = vld [vmem:[#allocation7 + $0x18] sm:$0xff]  ;;  %v2174_v34 = vmov 2102212464   ;;  %v2175_v37 = vmov 920167782   ;;  %s1490_s23 = sshll.u32 %s2347_s18, 4 }
  0x3d   : > { %636 = vmatpush.msra.mxu0 %v595_v6  ;;  %656 = vmatpush.msra.mxu1 %v596_v7  ;;  %v1932_v10 = vld [vmem:[#allocation2] ss:$0 sm:$0xff]  ;;  %v1933_v11 = vld [vmem:[#allocation5] ss:$0 sm:$0xff]  ;;  %v2176_v40 = vmov 1326507024  }
  0x3e   : > { %676 = vmatpush.msra.mxu2 %v597_v8  ;;  %696 = vmatpush.msra.mxu3 %v598_v9  ;;  %s2747_s13 = smov (!%p419_p3, %s1491_s13), 3  ;;  %s412_s25 = scalar_lea.vmem [#allocation10], %s1490_s23 }
  0x3f   : > { %s421_s10 = scalar_lea.vmem %s2708_s7, %s2747_s13  ;;  %s1825_s1 = sshll.u32 %s2152_s30, 4 }
  0x40   : > { %s1333_s4 = scalar_lea.hbm %s2709_s8, %s1825_s1  ;;  %s1320_s22 = scalar_lea.sflag [#allocation4], %s2347_s18 }
  0x41   : > { %s1337_s14 = sshll.u32 %s1333_s4, 4  ;;  %s2090_s20 = scalar_lea.hbm %s2709_s8, 32  ;;  %s1338_s14 = int_to_ptr.hbm [resolvable:$true] %s1337_s14 }
  0x42   : > { %s2084_s30 = sshra.s32 %s1338_s14, 4  ;;  %s2085_s30 = int_to_ptr.hbm [resolvable:$true] %s2084_s30 }
  0x43   : > { %s2086_s16 = scalar_lea.hbm %s2085_s30, 16  ;;  %p2091_p12 = scmp.lt.s32.totalorder %s2085_s30, %s2709_s8 }
  0x44   : > { %p2087_p7 = scmp.ne.s32.totalorder %s2085_s30, %s2086_s16  ;;  %p2092_p0 = scmp.lt.s32.totalorder %s2090_s20, %s2086_s16 }
  0x46   : > { %p2088_p10 = pnand %p2087_p7, %p2274_p8  ;;  %p2093_p1 = por %p2092_p0, %p2091_p12 }
  0x48   : > { %p2089_p11 = pneg %p2088_p10 }
  0x4a   : > { %p2094_p2 = pnand %p2093_p1, %p2089_p11 }
  0xad   : > { %v2361_v12 = vpop.permute.xlu0 %428 }
  0xae   : > { %v434_v13 = vmul.f32 %v1932_v10, %v2361_v12 }
  0xb0   : > { %v2364_v14 = vadd.f32 %v1933_v11, %v434_v13 }
  0xb2   : > { %v443_v15 = vand.u32 2139095040, %v2364_v14  ;;  %v440_v18 = vand.u32 2147483647, %v2364_v14  ;;  %vm442_vm12 = vcmp.lt.s32.totalorder %v2364_v14, 0 }
  0xb4   : > { %v444_v16 = vshrl.u32 %v443_v15, 23  ;;  %v447_v21 = vand.u32 8388607, %v440_v18  ;;  %vm441_vm13 = vcmp.le.f32.partialorder %v440_v18, 0.7853982 }
  0xb6   : > { %v1492_v17 = vadd.s32 4294967169, %v444_v16  ;;  %v448_v25 = vor.u32 8388608, %v447_v21 }
  0xb8   : > { %v450_v19 = vadd.s32 1, %v1492_v17  ;;  %v2381_v47 = vshll.u32 %v448_v25, 8 }
  0xba   : > { %vm451_vm0 = vcmp.gt.s32.totalorder %v450_v19, 0  ;;  %v489_v56 = vand.u32 65535, %v2381_v47  ;;  %v490_v57 = vshrl.u32 %v2381_v47, 16 }
  0xbb   : > { %v452_v20 = vsel %vm451_vm0, %v450_v19, 0 }
  0xbc   : > { %v454_v22 = vand.u32 31, %v452_v20  ;;  %v2372_v24 = vshrl.u32 %v452_v20, 5 }
  0xbe   : > { %v2370_v23 = vsub.s32 32, %v454_v22  ;;  %v457_v27 = vshll.u32 %v2171_v26, %v454_v22  ;;  %v460_v29 = vshll.u32 %v2172_v28, %v454_v22  ;;  %v463_v33 = vshll.u32 %v2173_v31, %v454_v22 }
  0xbf   : > { %v466_v36 = vshll.u32 %v2174_v34, %v454_v22  ;;  %v469_v39 = vshll.u32 %v2175_v37, %v454_v22  ;;  %vm472_vm1 = vcmp.lt.s32.totalorder %v2372_v24, 1  ;;  %vm475_vm2 = vcmp.lt.s32.totalorder %v2372_v24, 4 }
  0xc0   : > { %v458_v30 = vshrl.u32 %v2172_v28, %v2370_v23  ;;  %v461_v32 = vshrl.u32 %v2173_v31, %v2370_v23  ;;  %v464_v35 = vshrl.u32 %v2174_v34, %v2370_v23  ;;  %v467_v38 = vshrl.u32 %v2175_v37, %v2370_v23 }
  0xc1   : > { %v470_v41 = vshrl.u32 %v2176_v40, %v2370_v23  ;;  %vm474_vm3 = vcmp.lt.s32.totalorder %v2372_v24, 3  ;;  %vm473_vm4 = vcmp.lt.s32.totalorder %v2372_v24, 2  ;;  %v456_v22 = vshrl.u32 %v2171_v26, %v2370_v23 }
  0xc2   : > { %v459_v42 = vor.u32 %v458_v30, %v457_v27  ;;  %v462_v43 = vor.u32 %v461_v32, %v460_v29  ;;  %v465_v44 = vor.u32 %v464_v35, %v463_v33  ;;  %v468_v45 = vor.u32 %v467_v38, %v466_v36 }
  0xc3   : > { %v471_v46 = vor.u32 %v470_v41, %v469_v39 }
  0xc4   : > { %v480_v48 = vsel %vm472_vm1, %v459_v42, %v462_v43  ;;  %v484_v49 = vsel %vm472_vm1, %v462_v43, %v465_v44  ;;  %v481_v50 = vsel %vm475_vm2, %v468_v45, 920167782  ;;  %v477_v19 = vsel %vm475_vm2, %v465_v44, 2102212464 }
  0xc5   : > { %v485_v51 = vsel %vm475_vm2, %v471_v46, 1326507024  ;;  %v482_v52 = vsel %vm474_vm3, %v465_v44, %v481_v50  ;;  %v476_v31 = vsel %vm472_vm1, %v456_v22, %v459_v42  ;;  %v478_v32 = vsel %vm474_vm3, %v462_v43, %v477_v19 }
  0xc6   : > { %v486_v53 = vsel %vm474_vm3, %v468_v45, %v485_v51  ;;  %v483_v54 = vsel %vm473_vm4, %v480_v48, %v482_v52  ;;  %v479_v23 = vsel %vm473_vm4, %v476_v31, %v478_v32  ;;  %vm617_vm1 = vcmask 130048   ;;  %v1557_v32 = vld [vmem:[%s2351_s17 + $0x70] sm:$0xf] }
  0xc7   : > { %v487_v55 = vsel %vm473_vm4, %v484_v49, %v486_v53  ;;  %v513_v60 = vand.u32 65535, %v483_v54  ;;  %v514_v61 = vshrl.u32 %v483_v54, 16  ;;  %v533_v39 = vmul.u32 %v2381_v47, %v479_v23  ;;  %v1613_v23 = vld [vmem:[%s2351_s17 + $0xe0] sm:$0xf] }
  0xc8   : > { %v491_v58 = vand.u32 65535, %v487_v55  ;;  %v492_v59 = vshrl.u32 %v487_v55, 16  ;;  %vm583_vm2 = vweird.f32 %v2364_v14 }
  0xc9   : > { %v516_v1 = vmul.u32 %v514_v61, %v489_v56  ;;  %v517_v2 = vmul.u32 %v513_v60, %v490_v57  ;;  %v515_v6 = vmul.u32 %v513_v60, %v489_v56  ;;  %v518_v10 = vmul.u32 %v514_v61, %v490_v57 }
  0xca   : > { %v494_v62 = vmul.u32 %v492_v59, %v489_v56  ;;  %v495_v63 = vmul.u32 %v491_v58, %v490_v57  ;;  %v493_v3 = vmul.u32 %v491_v58, %v489_v56  ;;  %v496_v5 = vmul.u32 %v492_v59, %v490_v57 }
  0xcb   : > { %v519_v7 = vshll.u32 %v516_v1, 16  ;;  %v521_v13 = vshll.u32 %v517_v2, 16  ;;  %v520_v29 = vshrl.u32 %v516_v1, 16  ;;  %v522_v35 = vshrl.u32 %v517_v2, 16 }
  0xcc   : > { %v497_v4 = vshll.u32 %v494_v62, 16  ;;  %v499_v8 = vshll.u32 %v495_v63, 16  ;;  %v498_v25 = vshrl.u32 %v494_v62, 16  ;;  %v500_v33 = vshrl.u32 %v495_v63, 16 }
  0xcd   : > { %vm523_vm6 = vc.u32 %v515_v6, %v519_v7  ;;  %v525_v15 = vadd.s32 %v519_v7, %v515_v6 }
  0xce   : > { %vm501_vm5 = vc.u32 %v493_v3, %v497_v4  ;;  %v503_v9 = vadd.s32 %v497_v4, %v493_v3  ;;  %v524_v17 = vsel %vm523_vm6, 1, %v2170_v0 }
  0xcf   : > { %v502_v11 = vsel %vm501_vm5, 1, %v2170_v0  ;;  %v526_v21 = vadd.s32 %v524_v17, %v518_v10  ;;  %vm527_vm8 = vc.u32 %v525_v15, %v521_v13  ;;  %v529_v38 = vadd.s32 %v525_v15, %v521_v13 }
  0xd0   : > { %v504_v16 = vadd.s32 %v502_v11, %v496_v5  ;;  %vm505_vm7 = vc.u32 %v503_v9, %v499_v8  ;;  %v528_v28 = vsel %vm527_vm8, 1, %v2170_v0 }
  0xd1   : > { %v506_v20 = vsel %vm505_vm7, 1, %v2170_v0  ;;  %v530_v30 = vadd.s32 %v528_v28, %v526_v21 }
  0xd2   : > { %v508_v27 = vadd.s32 %v506_v20, %v504_v16 }
  0xd3   : > { %v531_v36 = vadd.s32 %v530_v30, %v520_v29 }
  0xd4   : > { %v509_v34 = vadd.s32 %v508_v27, %v498_v25 }
  0xd5   : > { %v532_v26 = vadd.s32 %v531_v36, %v522_v35  ;;  %v1792_v36 = vld [vmem:[%s2351_s17 + $0xf4] sm:$0xf0] }
  0xd6   : > { %v510_v37 = vadd.s32 %v509_v34, %v500_v33  ;;  %v1776_v33 = vld [vmem:[%s2351_s17 + $0x74] sm:$0xf0]  ;;  %v1621_v34 = vld [vmem:[%s2351_s17 + $0xf0] sm:$0xf] }
  0xd7   : > { %v536_v0 = vadd.s32 1, %v532_v26  ;;  %v1558_v35 = vor.u32 %v1776_v33, %v1557_v32  ;;  %v1766_v32 = vld [vmem:[%s2351_s17 + $0x24] sm:$0xf0]  ;;  %v1581_v33 = vld [vmem:[%s2351_s17 + $0xa0] sm:$0xf] }
  0xd8   : > { %vm535_vm9 = vc.u32 %v510_v37, %v529_v38  ;;  %v534_v24 = vadd.s32 %v529_v38, %v510_v37  ;;  %v1622_v37 = vor.u32 %v1792_v36, %v1621_v34  ;;  %v1774_v38 = vld [vmem:[%s2351_s17 + $0x64] sm:$0xf0] }
  0xd9   : > { %v537_v40 = vsel %vm535_vm9, %v536_v0, %v532_v26  ;;  %1213 = vmatpush.bf16.msrb.mxu0 %v1558_v35  ;;  %v1790_v0 = vld [vmem:[%s2351_s17 + $0xe4] sm:$0xf0] }
  0xda   : > { %v538_v41 = vadd.s32 %v537_v40, %v533_v39  ;;  %1226 = vmatpush.bf16.msrb.mxu1 %v1622_v37  ;;  %v1614_v39 = vor.u32 %v1790_v0, %v1613_v23  ;;  %v1685_v40 = vld [vmem:[%s2351_s17 + $0x170] sm:$0xf]  ;;  %v1782_v34 = vld [vmem:[%s2351_s17 + $0xa4] sm:$0xf0] }
  0xdb   : > { %v1582_v36 = vor.u32 %v1782_v34, %v1581_v33  ;;  %v1653_v37 = vld [vmem:[%s2351_s17 + $0x130] sm:$0xf]  ;;  %v1807_v34 = vld [vmem:[%s2351_s17 + $0x174] sm:$0xf] }
  0xdc   : > { %v539_v42 = vadd.s32 536870912, %v538_v41  ;;  %v1509_v0 = vld [vmem:[%s2351_s17 + $0x10] sm:$0xf] }
  0xde   : > { %v540_v44 = vshrl.u32 %v539_v42, 30  ;;  %v1749_v42 = vld [vmem:[%s2351_s17 + $0x1f0] sm:$0xf]  ;;  %1227 = vmatpush.bf16.msrb.mxu1 %v1614_v39  ;;  %v1764_v39 = vld [vmem:[%s2351_s17 + $0x14] sm:$0xf0] }
  0xe0   : > { %v541_v45 = vshll.u32 %v540_v44, 30  ;;  %v564_v1 = vsub.s32 4, %v540_v44 }
  0xe2   : > { %v542_v43 = vsub.s32 %v538_v41, %v541_v45  ;;  %v565_v6 = vsel %vm442_vm12, %v564_v1, %v540_v44  ;;  %v1808_v41 = vld [vmem:[%s2351_s17 + $0x174] sm:$0xf0] }
  0xe3   : > { %v567_v9 = vsel %vm441_vm13, 0, %v565_v6  ;;  %v1686_v44 = vor.u32 %v1808_v41, %v1685_v40  ;;  %v1824_v45 = vld [vmem:[%s2351_s17 + $0x1f4] sm:$0xf0]  ;;  %v1573_v41 = vld [vmem:[%s2351_s17 + $0x90] sm:$0xf] }
  0xe4   : > { %vm543_vm10 = vcmp.lt.s32.totalorder %v542_v43, 0  ;;  %v544_v46 = vsub.s32 0, %v542_v43  ;;  %v584_v16 = vadd.s32 3, %v567_v9  ;;  %v1804_v6 = vld [vmem:[%s2351_s17 + $0x154] sm:$0xf0] }
  0xe5   : > { %1239 = vmatpush.bf16.msrb.mxu2 %v1686_v44  ;;  %v1645_v44 = vld [vmem:[%s2351_s17 + $0x120] sm:$0xf] }
  0xe6   : > { %v545_v48 = vsel %vm543_vm10, %v544_v46, %v542_v43  ;;  %v585_v21 = vand.u32 3, %v584_v16  ;;  %v1541_v46 = vld [vmem:[%s2351_s17 + $0x50] sm:$0xf] }
  0xe7   : > { %v546_v49 = vclz %v545_v48  ;;  %v1772_v48 = vld [vmem:[%s2351_s17 + $0x54] sm:$0xf0]  ;;  %v1525_v16 = vld [vmem:[%s2351_s17 + $0x30] sm:$0xf] }
  0xe8   : > { %vm587_vm14 = vcmp.eq.s32.totalorder %v585_v21, 0  ;;  %vm590_vm15 = vcmp.eq.s32.totalorder %v585_v21, 2  ;;  %vm586_vm0 = vcmp.lt.s32.totalorder %v585_v21, 2  ;;  %v1661_v21 = vld [vmem:[%s2351_s17 + $0x140] sm:$0xf] }
  0xe9   : > { %v1493_v50 = vadd.s32 4294967294, %v546_v49  ;;  %v1605_v49 = vld [vmem:[%s2351_s17 + $0xd0] sm:$0xf] }
  0xeb   : > { %vm1494_vm11 = vcmp.lt.s32.totalorder %v1493_v50, 0 }
  0xec   : > { %v549_v51 = vsel %vm1494_vm11, 0, %v1493_v50  ;;  %v2442_v50 = vld [vmem:[%s2704_s3] sm:$0xf] }
  0xed   : > { %v550_v52 = vsub.s32 32, %v549_v51  ;;  %v554_v53 = vsub.s32 4294967266, %v549_v51  ;;  %v551_v54 = vshll.u32 %v542_v43, %v549_v51  ;;  %v1750_v43 = vor.u32 %v1824_v45, %v1749_v42  ;;  %v1780_v42 = vld [vmem:[%s2351_s17 + $0x94] sm:$0xf0] }
  0xee   : > { %v1542_v51 = vor.u32 %v1772_v48, %v1541_v46  ;;  %v607_v1 = vperm.slane %v2442_v50, 2  ;;  %v1510_v45 = vor.u32 %v1764_v39, %v1509_v0  ;;  %v1709_v46 = vld [vmem:[%s2351_s17 + $0x1a0] sm:$0xf]  ;;  %v1814_v48 = vld [vmem:[%s2351_s17 + $0x1a4] sm:$0xf0] }
  0xef   : > { %v552_v55 = vshrl.u32 %v534_v24, %v550_v52  ;;  %v555_v56 = vadd.s32 127, %v554_v53  ;;  %v1788_v24 = vld [vmem:[%s2351_s17 + $0xd4] sm:$0xf0]  ;;  %1252 = vmatpush.bf16.msrb.mxu3 %v1750_v43  ;;  %v1677_v53 = vld [vmem:[%s2351_s17 + $0x160] sm:$0xf] }
  0xf0   : > { %v1606_v52 = vor.u32 %v1788_v24, %v1605_v49  ;;  %v1798_v43 = vld [vmem:[%s2351_s17 + $0x124] sm:$0xf0]  ;;  %v1574_v49 = vor.u32 %v1780_v42, %v1573_v41 }
  0xf1   : > { %v553_v47 = vor.u32 %v552_v55, %v551_v54  ;;  %v556_v57 = vshll.u32 %v555_v56, 23  ;;  %v1806_v54 = vld [vmem:[%s2351_s17 + $0x164] sm:$0xf0]  ;;  %v1741_v55 = vld [vmem:[%s2351_s17 + $0x1e0] sm:$0xf] }
  0xf2   : > { %v2451_v56 = vld [vmem:[%s2706_s5] sm:$0xf]  ;;  %1228 = vmatpush.bf16.msrb.mxu1 %v1606_v52  ;;  %v1762_v24 = vld [vmem:[%s2351_s17 + $0x4] sm:$0xf0]  ;;  %v1565_v52 = vld [vmem:[%s2351_s17 + $0x80] sm:$0xf] }
  0xf3   : > { %v557_v58 = vor.u32 4788187, %v556_v57  ;;  %v560_v60 = vcvt.s32.f32 %v553_v47  ;;  %v1678_v47 = vor.u32 %v1806_v54, %v1677_v53  ;;  %v1822_v57 = vld [vmem:[%s2351_s17 + $0x1e4] sm:$0xf0]  ;;  %v704_v9 = vperm.slane %v2451_v56, 1 }
  0xf5   : > { %v558_v59 = vand.u32 2147483647, %v557_v58  ;;  %v1742_v58 = vor.u32 %v1822_v57, %v1741_v55  ;;  %1240 = vmatpush.bf16.msrb.mxu2 %v1678_v47  ;;  %v1646_v55 = vor.u32 %v1798_v43, %v1645_v44  ;;  %v1778_v47 = vld [vmem:[%s2351_s17 + $0x84] sm:$0xf0]  ;;  %v1775_v57 = vld [vmem:[%s2351_s17 + $0x74] sm:$0xf] }
  0xf6   : > { %v1771_v44 = vld [vmem:[%s2351_s17 + $0x54] sm:$0xf] }
  0xf7   : > { %v561_v61 = vmul.f32 %v560_v60, %v558_v59  ;;  %v1533_v59 = vld [vmem:[%s2351_s17 + $0x40] sm:$0xf]  ;;  %v1770_v60 = vld [vmem:[%s2351_s17 + $0x44] sm:$0xf0]  ;;  %1253 = vmatpush.bf16.msrb.mxu3 %v1742_v58  ;;  %v1559_v58 = vld [vmem:[%s2351_s17 + $0x78] sm:$0xf0] }
  0xf9   : > { %v562_v62 = vxor.u32 2147483648, %v561_v61 }
  0xfb   : > { %v563_v63 = vsel %vm442_vm12, %v562_v62, %v561_v61  ;;  %v1597_v61 = vld [vmem:[%s2351_s17 + $0xc0] sm:$0xf]  ;;  %v605_v62 = vperm.slane %v2442_v50, 0 }
  0xfc   : > { %v566_v2 = vsel %vm441_vm13, %v2364_v14, %v563_v63  ;;  %v1549_v14 = vld [vmem:[%s2351_s17 + $0x60] sm:$0xf]  ;;  %v606_v63 = vperm.slane %v2442_v50, 1 }
  0xfd   : > { %v568_v3 = vmul.f32 %v566_v2, %v566_v2  ;;  %v1550_v26 = vor.u32 %v1774_v38, %v1549_v14  ;;  %v1800_v14 = vld [vmem:[%s2351_s17 + $0x134] sm:$0xf0]  ;;  %v1717_v38 = vld [vmem:[%s2351_s17 + $0x1b0] sm:$0xf]  ;;  %v613_v53 = vmul.f32 %v605_v62, %v2361_v12  ;;  %v1623_v62 = vld [vmem:[%s2351_s17 + $0xf8] sm:$0xf0] }
  0xfe   : > { %v1654_v23 = vor.u32 %v1800_v14, %v1653_v37  ;;  %v614_v54 = vmul.f32 %v606_v63, %v2361_v12  ;;  %v1687_v14 = vld [vmem:[%s2351_s17 + $0x178] sm:$0xf0] }
  0xff   : > { %v569_v4 = vmul.f32 -0.001358992, %v568_v3  ;;  %v576_v5 = vmul.f32 -0.00019511016, %v568_v3  ;;  %1214 = vmatpush.bf16.msrb.mxu0 %v1550_v26  ;;  %v1816_v26 = vld [vmem:[%s2351_s17 + $0x1b4] sm:$0xf0]  ;;  %v1690_v41 = vor.u32 %v1807_v34, %v1687_v14 }
 0x100   : > { %v1718_v40 = vor.u32 %v1816_v26, %v1717_v38  ;;  %v1823_v38 = vld [vmem:[%s2351_s17 + $0x1f4] sm:$0xf]  ;;  %v1735_v14 = vld [vmem:[%s2351_s17 + $0x1d8] sm:$0xf0] }
 0x101   : > { %v570_v7 = vadd.f32 0.041655596, %v569_v4  ;;  %v577_v8 = vadd.f32 0.008332121, %v576_v5  ;;  %v1669_v5 = vld [vmem:[%s2351_s17 + $0x150] sm:$0xf] }
 0x102   : > { %v1819_v34 = vld [vmem:[%s2351_s17 + $0x1d4] sm:$0xf] }
 0x103   : > { %v571_v10 = vmul.f32 %v570_v7, %v568_v3  ;;  %v578_v11 = vmul.f32 %v577_v8, %v568_v3  ;;  %1215 = vmatpush.bf16.msrb.mxu0 %v1542_v51  ;;  %v1733_v7 = vld [vmem:[%s2351_s17 + $0x1d0] sm:$0xf]  ;;  %v703_v8 = vperm.slane %v2451_v56, 0  ;;  %v1501_v51 = vld [vmem:[%s2351_s17] sm:$0xf] }
 0x104   : > { %v1502_v63 = vor.u32 %v1762_v24, %v1501_v51 }
 0x105   : > { %v572_v13 = vadd.f32 -0.4999988, %v571_v10  ;;  %v579_v15 = vadd.f32 -0.16666654, %v578_v11  ;;  %v608_v10 = vperm.slane %v2442_v50, 3  ;;  %v1670_v11 = vor.u32 %v1804_v6, %v1669_v5 }
 0x106   : > { %v1796_v6 = vld [vmem:[%s2351_s17 + $0x114] sm:$0xf0] }
 0x107   : > { %v573_v17 = vmul.f32 %v572_v13, %v568_v3  ;;  %v580_v19 = vmul.f32 %v579_v15, %v568_v3  ;;  %v1786_v3 = vld [vmem:[%s2351_s17 + $0xc4] sm:$0xf0]  ;;  %v1820_v13 = vld [vmem:[%s2351_s17 + $0x1d4] sm:$0xf0]  ;;  %1241 = vmatpush.bf16.msrb.mxu2 %v1670_v11 }
 0x108   : > { %v1598_v4 = vor.u32 %v1786_v3, %v1597_v61  ;;  %v1734_v15 = vor.u32 %v1820_v13, %v1733_v7  ;;  %v1710_v61 = vor.u32 %v1814_v48, %v1709_v46  ;;  %v1637_v3 = vld [vmem:[%s2351_s17 + $0x110] sm:$0xf]  ;;  %v1812_v11 = vld [vmem:[%s2351_s17 + $0x194] sm:$0xf0]  ;;  %v705_v13 = vperm.slane %v2451_v56, 2 }
 0x109   : > { %v574_v20 = vadd.f32 1.0, %v573_v17  ;;  %v581_v18 = vadd.f32 1.0, %v580_v19  ;;  %v1768_v17 = vld [vmem:[%s2351_s17 + $0x34] sm:$0xf0]  ;;  %v1589_v19 = vld [vmem:[%s2351_s17 + $0xb0] sm:$0xf] }
 0x10a   : > { %1229 = vmatpush.bf16.msrb.mxu1 %v1598_v4  ;;  %1254 = vmatpush.bf16.msrb.mxu3 %v1734_v15  ;;  %v1701_v7 = vld [vmem:[%s2351_s17 + $0x190] sm:$0xf]  ;;  %v706_v15 = vperm.slane %v2451_v56, 3 }
 0x10b   : > { %v582_v22 = vmul.f32 %v581_v18, %v566_v2  ;;  %v591_v25 = vxor.u32 2147483648, %v574_v20  ;;  %v1534_v2 = vor.u32 %v1770_v60, %v1533_v59  ;;  %v1784_v18 = vld [vmem:[%s2351_s17 + $0xb4] sm:$0xf0] }
 0x10d   : > { %v588_v27 = vxor.u32 2147483648, %v582_v22  ;;  %v592_v29 = vsel %vm590_vm15, %v591_v25, %v582_v22  ;;  %1216 = vmatpush.bf16.msrb.mxu0 %v1534_v2  ;;  %v1802_v22 = vld [vmem:[%s2351_s17 + $0x144] sm:$0xf0]  ;;  %v1590_v25 = vor.u32 %v1784_v18, %v1589_v19  ;;  %v1791_v2 = vld [vmem:[%s2351_s17 + $0xf4] sm:$0xf] }
 0x10e   : > { %v1773_v19 = vld [vmem:[%s2351_s17 + $0x64] sm:$0xf] }
 0x10f   : > { %v589_v28 = vsel %vm587_vm14, %v574_v20, %v588_v27  ;;  %v1526_v20 = vor.u32 %v1768_v17, %v1525_v16  ;;  %v1662_v27 = vor.u32 %v1802_v22, %v1661_v21  ;;  %1230 = vmatpush.bf16.msrb.mxu1 %v1590_v25  ;;  %v1566_v16 = vor.u32 %v1778_v47, %v1565_v52 }
 0x110   : > { %v593_v30 = vsel %vm586_vm0, %v589_v28, %v592_v29  ;;  %v1725_v28 = vld [vmem:[%s2351_s17 + $0x1c0] sm:$0xf]  ;;  %v1818_v29 = vld [vmem:[%s2351_s17 + $0x1c4] sm:$0xf0]  ;;  %v1562_v17 = vor.u32 %v1775_v57, %v1559_v58  ;;  %v1626_v22 = vor.u32 %v1791_v2, %v1623_v62  ;;  %v1638_v25 = vor.u32 %v1796_v6, %v1637_v3  ;;  %v1743_v3 = vld [vmem:[%s2351_s17 + $0x1e8] sm:$0xf0] }
 0x111   : > { %v594_v31 = vsel %vm583_vm2, nan, %v593_v30  ;;  %v1517_v30 = vld [vmem:[%s2351_s17 + $0x20] sm:$0xf]  ;;  %1217 = vmatpush.bf16.msrb.mxu0 %v1526_v20  ;;  %1242 = vmatpush.bf16.msrb.mxu2 %v1662_v27  ;;  %v1551_v20 = vld [vmem:[%s2351_s17 + $0x68] sm:$0xf0] }
 0x112   : > { %1495 = vmatmul.msk.f32.vlgmr.msra.gmra.mxu0 %vm617_vm1, %v594_v31  ;;  %1496 = vmatmul.msk.f32.vlgmr.msra.gmra.mxu1 %vm617_vm1, %v594_v31  ;;  %v1518_v35 = vor.u32 %v1766_v32, %v1517_v30  ;;  %v1789_v27 = vld [vmem:[%s2351_s17 + $0xe4] sm:$0xf]  ;;  %v1702_v30 = vor.u32 %v1812_v11, %v1701_v7  ;;  %v1693_v32 = vld [vmem:[%s2351_s17 + $0x180] sm:$0xf] }
 0x113   : > { %1497 = vmatmul.msk.f32.vlgmr.msra.gmra.mxu2 %vm617_vm1, %v594_v31  ;;  %1498 = vmatmul.msk.f32.vlgmr.msra.gmra.mxu3 %vm617_vm1, %v594_v31  ;;  %v1726_v31 = vor.u32 %v1818_v29, %v1725_v28  ;;  %v1615_v28 = vld [vmem:[%s2351_s17 + $0xe8] sm:$0xf0]  ;;  %v1629_v29 = vld [vmem:[%s2351_s17 + $0x100] sm:$0xf]  ;;  %v1769_v7 = vld [vmem:[%s2351_s17 + $0x44] sm:$0xf] }
 0x114   : > { %1231 = vmatpush.bf16.msrb.mxu1 %v1582_v36  ;;  %v1554_v36 = vor.u32 %v1773_v19, %v1551_v20  ;;  %v1618_v37 = vor.u32 %v1789_v27, %v1615_v28  ;;  %v1599_v28 = vld [vmem:[%s2351_s17 + $0xc8] sm:$0xf0] }
 0x115   : > { %1255 = vmatpush.bf16.msrb.mxu3 %v1726_v31  ;;  %1218 = vmatpush.bf16.msrb.mxu0 %v1518_v35  ;;  %v1794_v31 = vld [vmem:[%s2351_s17 + $0x104] sm:$0xf0]  ;;  %v616_v35 = vmul.f32 %v608_v10, %v2361_v12 }
 0x116   : > { %1243 = vmatpush.bf16.msrb.mxu2 %v1654_v23  ;;  %v1751_v23 = vld [vmem:[%s2351_s17 + $0x1f8] sm:$0xf0] }
 0x117   : > { %v1754_v42 = vor.u32 %v1823_v38, %v1751_v23  ;;  %v1767_v38 = vld [vmem:[%s2351_s17 + $0x34] sm:$0xf]  ;;  %v1527_v23 = vld [vmem:[%s2351_s17 + $0x38] sm:$0xf0] }
 0x118   : > { %1232 = vmatpush.bf16.msrb.mxu1 %v1574_v49 }
 0x119   : > { %1256 = vmatpush.bf16.msrb.mxu3 %v1718_v40  ;;  %1219 = vmatpush.bf16.msrb.mxu0 %v1510_v45  ;;  %v1630_v40 = vor.u32 %v1794_v31, %v1629_v29  ;;  %v1543_v45 = vld [vmem:[%s2351_s17 + $0x58] sm:$0xf0]  ;;  %v1803_v29 = vld [vmem:[%s2351_s17 + $0x154] sm:$0xf] }
 0x11a   : > { %1244 = vmatpush.bf16.msrb.mxu2 %v1646_v55  ;;  %v1546_v52 = vor.u32 %v1771_v44, %v1543_v45  ;;  %v1805_v55 = vld [vmem:[%s2351_s17 + $0x164] sm:$0xf] }
 0x11b   : > { %v1801_v45 = vld [vmem:[%s2351_s17 + $0x144] sm:$0xf] }
 0x11c   : > { %1233 = vmatpush.bf16.msrb.mxu1 %v1566_v16  ;;  %v1535_v16 = vld [vmem:[%s2351_s17 + $0x48] sm:$0xf0] }
 0x11d   : > { %1257 = vmatpush.bf16.msrb.mxu3 %v1710_v61  ;;  %1220 = vmatpush.bf16.msrb.mxu0 %v1502_v63  ;;  %v1821_v61 = vld [vmem:[%s2351_s17 + $0x1e4] sm:$0xf]  ;;  %v1538_v27 = vor.u32 %v1769_v7, %v1535_v16 }
 0x11e   : > { %1245 = vmatpush.bf16.msrb.mxu2 %v1638_v25 }
 0x120   : > { %1278 = vmatpush.bf16.msra.mxu1 %v1626_v22 }
 0x121   : > { %1265 = vmatpush.bf16.msra.mxu0 %v1562_v17  ;;  %1258 = vmatpush.bf16.msrb.mxu3 %v1702_v30  ;;  %v1785_v17 = vld [vmem:[%s2351_s17 + $0xc4] sm:$0xf] }
 0x122   : > { %1246 = vmatpush.bf16.msrb.mxu2 %v1630_v40  ;;  %v1783_v40 = vld [vmem:[%s2351_s17 + $0xb4] sm:$0xf] }
 0x124   : > { %1279 = vmatpush.bf16.msra.mxu1 %v1618_v37 }
 0x125   : > { %1266 = vmatpush.bf16.msra.mxu0 %v1554_v36 }
 0x126   : > { %1291 = vmatpush.bf16.msra.mxu2 %v1690_v41  ;;  %v1591_v41 = vld [vmem:[%s2351_s17 + $0xb8] sm:$0xf0] }
 0x127   : > { %v1594_v44 = vor.u32 %v1783_v40, %v1591_v41  ;;  %v1711_v40 = vld [vmem:[%s2351_s17 + $0x1a8] sm:$0xf0] }
 0x129   : > { %1267 = vmatpush.bf16.msra.mxu0 %v1546_v52  ;;  %v1727_v52 = vld [vmem:[%s2351_s17 + $0x1c8] sm:$0xf0] }
 0x12d   : > { %1268 = vmatpush.bf16.msra.mxu0 %v1538_v27 }
 0x18f   : > { %v638_v59 = vpop.f32.mrf.mxu0  ;;  %v658_v60 = vpop.f32.mrf.mxu1 }
 0x190   : > { %v639_v4 = vadd.f32 %v638_v59, %v613_v53  ;;  %v659_v5 = vadd.f32 %v658_v60, %v614_v54  ;;  %v1787_v53 = vld [vmem:[%s2351_s17 + $0xd4] sm:$0xf]  ;;  %v1607_v54 = vld [vmem:[%s2351_s17 + $0xd8] sm:$0xf0]  ;;  %v1679_v60 = vld [vmem:[%s2351_s17 + $0x168] sm:$0xf0] }
 0x192   : > { %v2516_v18 = vadd.f32 %v703_v8, %v639_v4  ;;  %v2520_v21 = vadd.f32 %v704_v9, %v659_v5  ;;  %v1810_v8 = vld [vmem:[%s2351_s17 + $0x184] sm:$0xf0]  ;;  %v615_v9 = vmul.f32 %v607_v1, %v2361_v12  ;;  %v1610_v5 = vor.u32 %v1787_v53, %v1607_v54 }
 0x193   : > { %v1694_v50 = vor.u32 %v1810_v8, %v1693_v32  ;;  %v1602_v8 = vor.u32 %v1785_v17, %v1599_v28  ;;  %v1511_v28 = vld [vmem:[%s2351_s17 + $0x18] sm:$0xf0] }
 0x194   : > { %v2529_v33 = vmul.f32 0.70710677, %v2516_v18  ;;  %v2532_v56 = vmul.f32 0.70710677, %v2520_v21  ;;  %1280 = vmatpush.bf16.msra.mxu1 %v1610_v5 }
 0x195   : > { %1259 = vmatpush.bf16.msrb.mxu3 %v1694_v50 }
 0x196   : > { %v723_v26 = vand.u32 2147483647, %v2529_v33  ;;  %v724_v0 = vand.u32 2147483647, %v2532_v56  ;;  %v678_v1 = vpop.f32.mrf.mxu2  ;;  %v698_v39 = vpop.f32.mrf.mxu3  ;;  %vm799_vm3 = vcmp.ge.f32.partialorder %v2529_v33, 0.0  ;;  %vm800_vm4 = vcmp.ge.f32.partialorder %v2532_v56, 0.0 }
 0x197   : > { %v679_v12 = vadd.f32 %v678_v1, %v615_v9  ;;  %v699_v10 = vadd.f32 %v698_v39, %v616_v35  ;;  %v1671_v9 = vld [vmem:[%s2351_s17 + $0x158] sm:$0xf0]  ;;  %v1738_v1 = vor.u32 %v1819_v34, %v1735_v14  ;;  %v1647_v14 = vld [vmem:[%s2351_s17 + $0x128] sm:$0xf0] }
 0x198   : > { %v727_v43 = vmul.f32 0.3275911, %v723_v26  ;;  %v775_v46 = vsub.f32 0.0, %v723_v26  ;;  %v728_v48 = vmul.f32 0.3275911, %v724_v0  ;;  %v776_v49 = vsub.f32 0.0, %v724_v0  ;;  %1281 = vmatpush.bf16.msra.mxu1 %v1602_v8 }
 0x199   : > { %v2548_v51 = vadd.f32 %v705_v13, %v679_v12  ;;  %v2550_v24 = vadd.f32 %v706_v15, %v699_v10  ;;  %1304 = vmatpush.bf16.msra.mxu3 %v1754_v42  ;;  %v1682_v13 = vor.u32 %v1805_v55, %v1679_v60  ;;  %v1746_v15 = vor.u32 %v1821_v61, %v1743_v3  ;;  %v1765_v55 = vld [vmem:[%s2351_s17 + $0x24] sm:$0xf]  ;;  %v1583_v60 = vld [vmem:[%s2351_s17 + $0xa8] sm:$0xf0]  ;;  %v1799_v61 = vld [vmem:[%s2351_s17 + $0x134] sm:$0xf] }
 0x19a   : > { %v731_v47 = vadd.f32 1.0, %v727_v43  ;;  %v779_v57 = vmul.f32 %v775_v46, %v723_v26  ;;  %v732_v58 = vadd.f32 1.0, %v728_v48  ;;  %v780_v59 = vmul.f32 %v776_v49, %v724_v0  ;;  %v1663_v43 = vld [vmem:[%s2351_s17 + $0x148] sm:$0xf0]  ;;  %v1817_v49 = vld [vmem:[%s2351_s17 + $0x1c4] sm:$0xf] }
 0x19b   : > { %v2558_v2 = vmul.f32 0.70710677, %v2548_v51  ;;  %v2561_v62 = vmul.f32 0.70710677, %v2550_v24  ;;  %1292 = vmatpush.bf16.msra.mxu2 %v1682_v13  ;;  %v1674_v37 = vor.u32 %v1803_v29, %v1671_v9  ;;  %v1530_v10 = vor.u32 %v1767_v38, %v1527_v23  ;;  %v1655_v3 = vld [vmem:[%s2351_s17 + $0x138] sm:$0xf0] }
 0x19c   : > { %1934 = vrcp.f32 %v731_v47  ;;  %v2564_v4 = vmul.f32 1.442695, %v779_v57  ;;  %v2569_v11 = vmul.f32 1.442695, %v780_v59  ;;  %v1666_v48 = vor.u32 %v1801_v45, %v1663_v43  ;;  %1282 = vmatpush.bf16.msra.mxu1 %v1594_v44  ;;  %v1519_v47 = vld [vmem:[%s2351_s17 + $0x28] sm:$0xf0] }
 0x19d   : > { %1936 = vrcp.f32 %v732_v58  ;;  %v725_v63 = vand.u32 2147483647, %v2558_v2  ;;  %v726_v6 = vand.u32 2147483647, %v2561_v62  ;;  %1305 = vmatpush.bf16.msra.mxu3 %v1746_v15  ;;  %1269 = vmatpush.bf16.msra.mxu0 %v1530_v10  ;;  %v1730_v54 = vor.u32 %v1817_v49, %v1727_v52  ;;  %v1781_v57 = vld [vmem:[%s2351_s17 + $0xa4] sm:$0xf] }
 0x19e   : > { %v1522_v59 = vor.u32 %v1765_v55, %v1519_v47  ;;  %v1658_v7 = vor.u32 %v1799_v61, %v1655_v3  ;;  %v1815_v13 = vld [vmem:[%s2351_s17 + $0x1b4] sm:$0xf]  ;;  %v1719_v15 = vld [vmem:[%s2351_s17 + $0x1b8] sm:$0xf0]  ;;  %v1797_v9 = vld [vmem:[%s2351_s17 + $0x124] sm:$0xf] }
 0x19f   : > { %v729_v19 = vmul.f32 0.3275911, %v725_v63  ;;  %v777_v20 = vsub.f32 0.0, %v725_v63  ;;  %v730_v22 = vmul.f32 0.3275911, %v726_v6  ;;  %v778_v25 = vsub.f32 0.0, %v726_v6  ;;  %1293 = vmatpush.bf16.msra.mxu2 %v1674_v37 }
 0x1a0   : > { %v1779_v29 = vld [vmem:[%s2351_s17 + $0x94] sm:$0xf]  ;;  %v1575_v8 = vld [vmem:[%s2351_s17 + $0x98] sm:$0xf0]  ;;  %v1777_v44 = vld [vmem:[%s2351_s17 + $0x84] sm:$0xf] }
 0x1a1   : > { %v733_v30 = vadd.f32 1.0, %v729_v19  ;;  %v781_v31 = vmul.f32 %v777_v20, %v725_v63  ;;  %v734_v32 = vadd.f32 1.0, %v730_v22  ;;  %v782_v36 = vmul.f32 %v778_v25, %v726_v6  ;;  %1306 = vmatpush.bf16.msra.mxu3 %v1738_v1  ;;  %1270 = vmatpush.bf16.msra.mxu0 %v1522_v59  ;;  %v1763_v22 = vld [vmem:[%s2351_s17 + $0x14] sm:$0xf]  ;;  %v1703_v59 = vld [vmem:[%s2351_s17 + $0x198] sm:$0xf0] }
 0x1a2   : > { %v2577_v35 = vpop.eup %1934  ;;  %v1586_v6 = vor.u32 %v1781_v57, %v1583_v60  ;;  %v1722_v20 = vor.u32 %v1815_v13, %v1719_v15  ;;  %v1578_v37 = vor.u32 %v1779_v29, %v1575_v8  ;;  %v1650_v1 = vor.u32 %v1797_v9, %v1647_v14  ;;  %v1795_v49 = vld [vmem:[%s2351_s17 + $0x114] sm:$0xf] }
 0x1a3   : > { %v2582_v26 = vpop.eup %1936  ;;  %1938 = vrcp.f32 %v733_v30  ;;  %v2584_v0 = vmul.f32 1.442695, %v781_v31  ;;  %v739_v39 = vmul.f32 1.0614054, %v2577_v35  ;;  %v2588_v50 = vmul.f32 1.442695, %v782_v36  ;;  %1294 = vmatpush.bf16.msra.mxu2 %v1666_v48 }
 0x1a4   : > { %1940 = vrcp.f32 %v734_v32  ;;  %v740_v12 = vmul.f32 1.0614054, %v2582_v26  ;;  %1283 = vmatpush.bf16.msra.mxu1 %v1586_v6  ;;  %v1514_v32 = vor.u32 %v1763_v22, %v1511_v28  ;;  %v1567_v48 = vld [vmem:[%s2351_s17 + $0x88] sm:$0xf0]  ;;  %vm801_vm5 = vcmp.ge.f32.partialorder %v2558_v2, 0.0 }
 0x1a5   : > { %v743_v42 = vadd.f32 -1.4531521, %v739_v39  ;;  %1307 = vmatpush.bf16.msra.mxu3 %v1730_v54  ;;  %1942 = vpow2.f32 %v2564_v4  ;;  %v1813_v39 = vld [vmem:[%s2351_s17 + $0x1a4] sm:$0xf]  ;;  %v1503_v4 = vld [vmem:[%s2351_s17 + $0x8] sm:$0xf0] }
 0x1a6   : > { %v744_v46 = vadd.f32 -1.4531521, %v740_v12  ;;  %1271 = vmatpush.bf16.msra.mxu0 %v1514_v32  ;;  %1944 = vpow2.f32 %v2569_v11  ;;  %v1714_v41 = vor.u32 %v1813_v39, %v1711_v40  ;;  %v1639_v54 = vld [vmem:[%s2351_s17 + $0x118] sm:$0xf0]  ;;  %v1631_v6 = vld [vmem:[%s2351_s17 + $0x108] sm:$0xf0] }
 0x1a7   : > { %v747_v53 = vmul.f32 %v2577_v35, %v743_v42  ;;  %1295 = vmatpush.bf16.msra.mxu2 %v1658_v7  ;;  %v1761_v42 = vld [vmem:[%s2351_s17 + $0x4] sm:$0xf]  ;;  %v1642_v57 = vor.u32 %v1795_v49, %v1639_v54  ;;  %1946 = vpow2.f32 %v2584_v0  ;;  %v716_v40 = vmul.f32 0.5, %v2520_v21 }
 0x1a8   : > { %v748_v58 = vmul.f32 %v2582_v26, %v744_v46  ;;  %1284 = vmatpush.bf16.msra.mxu1 %v1578_v37  ;;  %v1506_v46 = vor.u32 %v1761_v42, %v1503_v4  ;;  %v1809_v7 = vld [vmem:[%s2351_s17 + $0x184] sm:$0xf]  ;;  %1948 = vpow2.f32 %v2588_v50  ;;  %vm802_vm6 = vcmp.ge.f32.partialorder %v2561_v62, 0.0 }
 0x1a9   : > { %v2604_v5 = vpop.eup %1938  ;;  %v751_v63 = vadd.f32 1.4214138, %v747_v53  ;;  %1308 = vmatpush.bf16.msra.mxu3 %v1722_v20  ;;  %v1570_v53 = vor.u32 %v1777_v44, %v1567_v48  ;;  %v1695_v20 = vld [vmem:[%s2351_s17 + $0x188] sm:$0xf0] }
 0x1aa   : > { %v2608_v16 = vpop.eup %1940  ;;  %v752_v17 = vadd.f32 1.4214138, %v748_v58  ;;  %v741_v19 = vmul.f32 1.0614054, %v2604_v5  ;;  %1272 = vmatpush.bf16.msra.mxu0 %v1506_v46  ;;  %v1811_v58 = vld [vmem:[%s2351_s17 + $0x194] sm:$0xf] }
 0x1ab   : > { %v755_v25 = vmul.f32 %v2577_v35, %v751_v63  ;;  %v742_v27 = vmul.f32 1.0614054, %v2608_v16  ;;  %1296 = vmatpush.bf16.msra.mxu2 %v1650_v1  ;;  %v1706_v3 = vor.u32 %v1811_v58, %v1703_v59  ;;  %v1793_v63 = vld [vmem:[%s2351_s17 + $0x104] sm:$0xf]  ;;  %v1943_v13 = vpop.eup %1942  ;;  %v718_v46 = vmul.f32 0.5, %v2550_v24  ;;  %s1335_s17 = sshll.u32 %s412_s25, 4  ;;  %s1336_s17 = int_to_ptr.vmem [resolvable:$true] %s1335_s17 }
 0x1ac   : > { %v756_v30 = vmul.f32 %v2582_v26, %v752_v17  ;;  %v745_v31 = vadd.f32 -1.4531521, %v741_v19  ;;  %1285 = vmatpush.bf16.msra.mxu1 %v1570_v53  ;;  %v1634_v19 = vor.u32 %v1793_v63, %v1631_v6  ;;  %v1945_v22 = vpop.eup %1944  ;;  %v887_v24 = vld [vmem:[%s421_s10] sm:$0x3] }
 0x1ad   : > { %v759_v34 = vadd.f32 -0.28449672, %v755_v25  ;;  %v746_v36 = vadd.f32 -1.4531521, %v742_v27  ;;  %1309 = vmatpush.bf16.msra.mxu3 %v1714_v41  ;;  %v889_v62 = vperm.slane %v887_v24, 0  ;;  %v890_v6 = vperm.slane %v887_v24, 1 }
 0x1ae   : > { %v760_v38 = vadd.f32 -0.28449672, %v756_v30  ;;  %v749_v23 = vmul.f32 %v2604_v5, %v745_v31 }
 0x1af   : > { %v763_v12 = vmul.f32 %v2577_v35, %v759_v34  ;;  %v750_v10 = vmul.f32 %v2608_v16, %v746_v36  ;;  %1297 = vmatpush.bf16.msra.mxu2 %v1642_v57  ;;  %v1947_v36 = vpop.eup %1946 }
 0x1b0   : > { %v764_v45 = vmul.f32 %v2582_v26, %v760_v38  ;;  %v753_v43 = vadd.f32 1.4214138, %v749_v23  ;;  %v1949_v14 = vpop.eup %1948  ;;  %v715_v38 = vmul.f32 0.5, %v2516_v18 }
 0x1b1   : > { %v767_v11 = vadd.f32 0.2548296, %v763_v12  ;;  %v754_v52 = vadd.f32 1.4214138, %v750_v10  ;;  %1310 = vmatpush.bf16.msra.mxu3 %v1706_v3 }
 0x1b2   : > { %v768_v55 = vadd.f32 0.2548296, %v764_v45  ;;  %v757_v47 = vmul.f32 %v2604_v5, %v753_v43  ;;  %v717_v45 = vmul.f32 0.5, %v2548_v51 }
 0x1b3   : > { %v771_v60 = vmul.f32 %v2577_v35, %v767_v11  ;;  %v758_v61 = vmul.f32 %v2608_v16, %v754_v52  ;;  %v1698_v35 = vor.u32 %v1809_v7, %v1695_v20  ;;  %1298 = vmatpush.bf16.msra.mxu2 %v1634_v19 }
 0x1b4   : > { %v772_v15 = vmul.f32 %v2582_v26, %v768_v55  ;;  %v761_v17 = vadd.f32 -0.28449672, %v757_v47 }
 0x1b5   : > { %v791_v25 = vmul.f32 %v1943_v13, %v771_v60  ;;  %v762_v27 = vadd.f32 -0.28449672, %v758_v61  ;;  %1311 = vmatpush.bf16.msra.mxu3 %v1698_v35 }
 0x1b6   : > { %v792_v28 = vmul.f32 %v1945_v22, %v772_v15  ;;  %v765_v29 = vmul.f32 %v2604_v5, %v761_v17 }
 0x1b7   : > { %v795_v30 = vsub.f32 1.0, %v791_v25  ;;  %v766_v31 = vmul.f32 %v2608_v16, %v762_v27 }
 0x1b8   : > { %v796_v26 = vsub.f32 1.0, %v792_v28  ;;  %v769_v32 = vadd.f32 0.2548296, %v765_v29 }
 0x1b9   : > { %v803_v8 = vsub.f32 0.0, %v795_v30  ;;  %v770_v9 = vadd.f32 0.2548296, %v766_v31 }
 0x1ba   : > { %v804_v0 = vsub.f32 0.0, %v796_v26  ;;  %v773_v34 = vmul.f32 %v2604_v5, %v769_v32 }
 0x1bb   : > { %v807_v50 = vsel %vm799_vm3, %v795_v30, %v803_v8  ;;  %v774_v37 = vmul.f32 %v2608_v16, %v770_v9 }
 0x1bc   : > { %v811_v23 = vadd.f32 1.0, %v807_v50  ;;  %v808_v1 = vsel %vm800_vm4, %v796_v26, %v804_v0  ;;  %v793_v39 = vmul.f32 %v1947_v36, %v773_v34 }
 0x1bd   : > { %v812_v12 = vadd.f32 1.0, %v808_v1  ;;  %v794_v10 = vmul.f32 %v1949_v14, %v774_v37 }
 0x1be   : > { %v815_v33 = vmul.f32 %v811_v23, %v715_v38  ;;  %v797_v41 = vsub.f32 1.0, %v793_v39 }
 0x1bf   : > { %v816_v42 = vmul.f32 %v812_v12, %v716_v40  ;;  %v798_v5 = vsub.f32 1.0, %v794_v10 }
 0x1c0   : > { %v819_v4 = vpack.c.bf16 %v815_v33, %v815_v33  ;;  %v805_v44 = vsub.f32 0.0, %v797_v41 }
 0x1c1   : > { %v820_v56 = vpack.c.bf16 %v816_v42, %v816_v42  ;;  %v806_v16 = vsub.f32 0.0, %v798_v5 }
 0x1c2   : > { %1221 = vmatmul.bf16.vlgmr.msrb.gmra.mxu0 %v819_v4  ;;  %v809_v18 = vsel %vm801_vm5, %v797_v41, %v805_v44 }
 0x1c3   : > { %1234 = vmatmul.bf16.vlgmr.msrb.gmra.mxu1 %v820_v56  ;;  %v813_v21 = vadd.f32 1.0, %v809_v18  ;;  %v810_v43 = vsel %vm802_vm6, %v798_v5, %v806_v16 }
 0x1c4   : > { %v814_v48 = vadd.f32 1.0, %v810_v43 }
 0x1c5   : > { %v817_v49 = vmul.f32 %v813_v21, %v717_v45 }
 0x1c6   : > { %v818_v11 = vmul.f32 %v814_v48, %v718_v46 }
 0x1c7   : > { %v821_v52 = vpack.c.bf16 %v817_v49, %v817_v49 }
 0x1c8   : > { %v822_v53 = vpack.c.bf16 %v818_v11, %v818_v11 }
 0x1c9   : > { %1247 = vmatmul.bf16.vlgmr.msrb.gmra.mxu2 %v821_v52 }
 0x1ca   : > { %1260 = vmatmul.bf16.vlgmr.msrb.gmra.mxu3 %v822_v53 }
 0x1d2   : > { %1273 = vmatmul.bf16.vlgmr.msra.gmra.mxu0 %v819_v4 }
 0x1d3   : > { %1286 = vmatmul.bf16.vlgmr.msra.gmra.mxu1 %v820_v56 }
 0x1d9   : > { %1299 = vmatmul.bf16.vlgmr.msra.gmra.mxu2 %v821_v52 }
 0x1da   : > { %1312 = vmatmul.bf16.vlgmr.msra.gmra.mxu3 %v822_v53 }
 0x23f   : > { %v1222_v51 = vpop.f32.mrf.mxu0 }
 0x240   : > { %v1235_v2 = vpop.f32.mrf.mxu1  ;;  %v1223_v54 = vadd.f32 %v1222_v51, %v889_v62 }
 0x242   : > { %v1236_v57 = vadd.f32 %v1235_v2, %v1223_v54 }
 0x247   : > { %v1224_v55 = vpop.f32.mrf.mxu0 }
 0x248   : > { %v1237_v47 = vpop.f32.mrf.mxu1 }
 0x24c   : > { %v1248_v58 = vpop.f32.mrf.mxu2 }
 0x24d   : > { %v1249_v59 = vadd.f32 %v1248_v58, %v1236_v57  ;;  %v1261_v60 = vpop.f32.mrf.mxu3 }
 0x24f   : > { %v1262_v61 = vadd.f32 %v1261_v60, %v1249_v59  ;;  %v1274_v3 = vpop.f32.mrf.mxu0 }
 0x250   : > { %v1287_v63 = vpop.f32.mrf.mxu1  ;;  %v1275_v15 = vadd.f32 %v1274_v3, %v890_v6 }
 0x251   : > { %1317 = vst [vmem:[%s412_s25] sm:$0xff] %v1262_v61 }
 0x252   : > { %v1288_v20 = vadd.f32 %v1287_v63, %v1275_v15 }
 0x254   : > { %v1250_v7 = vpop.f32.mrf.mxu2 }
 0x255   : > { %v1263_v13 = vpop.f32.mrf.mxu3 }
 0x257   : > { %v1276_v17 = vpop.f32.mrf.mxu0 }
 0x258   : > { %v1289_v19 = vpop.f32.mrf.mxu1 }
 0x25c   : > { %v1300_v22 = vpop.f32.mrf.mxu2 }
 0x25d   : > { %v1301_v25 = vadd.f32 %v1300_v22, %v1288_v20  ;;  %v1313_v27 = vpop.f32.mrf.mxu3 }
 0x25f   : > { %v1314_v35 = vadd.f32 %v1313_v27, %v1301_v25 }
 0x261   : > { %1318 = vst [vmem:[%s412_s25 + $0x8] sm:$0xff] %v1314_v35 }
 0x262   : > { %2097 = shalt.err (!%p2094_p2)
}
 0x263   : > { %1840 = dma.vmem_to_hbm [thread:$0]  (%p2274_p8), %s1336_s17, 256, %s1338_s14, %s1320_s22  }
 0x264   : > { %v1302_v28 = vpop.f32.mrf.mxu2 }
 0x265   : > { %v1315_v29 = vpop.f32.mrf.mxu3 }
 0x266 PF: > { %s2736_s18 = sld [smem:[#allocation15_spill]]  ;;  %p1857_p4 = pnand %p1481_p13, %p2278_p9 }
 0x267   : > { %s2738_s10 = sld [smem:[#allocation16_spill]] }
 0x268   : > { %p1858_p5 = pneg %p1857_p4 }
 0x26c   : > { %s1349_s23 = sand.u32 1, %s2736_s18  }
 0x26d   : > { %s1350_s25 = scalar_lea.sflag [#allocation4], %s1349_s23 }
 0x26e   : > { %2135 = dma.done.wait (%p1858_p5), %s1350_s25, 256  }
 0x26f   : > { %2137 = vsyncadd (%p1858_p5), %s1350_s25, 4294967040  ;;  %s26_s10 = sadd.s32 1, %s2738_s10   ;;  %s2739_s27 = smov %s2144_s28 }
 0x270   : > { %p23_p6 = scmp.ge.s32.totalorder %s26_s10, 4   ;;  %s2740_s28 = smov %s2148_s29 }
 0x271   : > { %s2741_s29 = smov %s2332_s2  ;;  %s2742_s30 = smov %s2156_s9 }
 0x272   : > { %s2743_s9 = smov %s2745_s24  ;;  %25 = sbr.rel (!%p23_p6) target bundleno = 12 (0xc), region = 116 }
 0x277   :  { %1356 = vsyncpa [#allocation3], 1 }
 0x278   :  { %1358 = vsyncpa [#allocation3 + $0x1], 1 }
 0x279   :  { %1359 = vsyncpa [#allocation6], 1 }
 0x27a   :  { %1360 = vsyncpa [#allocation9], 1 }
 0x27b   :  { %1362 = vsyncpa [#allocation9 + $0x1], 1 }
 0x27c   :  { %1363 = vsyncpa [#allocation4], 1 }
 0x27d   :  { %1365 = vsyncpa [#allocation4 + $0x1], 1 }

</bundles_post_ra>
